<compile_context>
chip_gen: v7x
topology: tpu7x:2x2x1
jax: 0.10.0
libtpu: 0.0.40
codegen_flags: <defaults>
</compile_context>

<pallas_src>
import functools

import jax
import jax.numpy as jnp
from jax.experimental import pallas as pl
from jax.experimental.pallas import tpu as pltpu

_LANE = 128


def _round_up(x, m):
    return ((x + m - 1) // m) * m


def _rnn_seq_kernel(xproj_ref, h0_ref, wh_ref, out_ref, hfin_ref, h_scr,
                    *, output_size, t_chunk, t_total, h_pad):
    """One grid step = `t_chunk` recurrence steps.

    xproj_ref: (t_chunk, b_tile, H_pad + O_pad)  precomputed x @ Wx + bias
    h0_ref   : (b_tile, H_pad)                   initial hidden
    wh_ref   : (H_pad, H_pad + O_pad)            recurrent weight (resident)
    out_ref  : (t_chunk, b_tile, O_pad)          per-step log-softmax output
    hfin_ref : (b_tile, H_pad)                   final hidden (last chunk only)
    h_scr    : (b_tile, H_pad) VMEM scratch      hidden carry across chunks
    """
    c = pl.program_id(1)

    @pl.when(c == 0)
    def _():
        h_scr[...] = h0_ref[...]

    wh = wh_ref[...]                       # resident weight, loaded once per chunk
    b_tile, o_pad = out_ref.shape[1], out_ref.shape[2]

    # Hoisted out of the step loop: logit-lane mask for the masked log-softmax.
    col = jax.lax.broadcasted_iota(jnp.int32, (b_tile, o_pad), 1)
    is_logit = col < output_size

    h = h_scr[...]                         # (b_tile, H_pad) f32 carry, lives in vregs
    # Full static unroll over the chunk: t_chunk is a small Python int, so this
    # traces to straight-line code and keeps the carry out of VMEM.
    for i in range(t_chunk):
        z = xproj_ref[i] + jnp.dot(h.astype(wh.dtype), wh,
                                   preferred_element_type=jnp.float32)
        logits = z[:, h_pad:]              # lane-aligned slice (O_pad lanes)

        # Numerically-stable log-softmax over the real logit lanes; padding
        # lanes are forced to -inf *before* exp so they can never overflow in.
        m = jnp.max(jnp.where(is_logit, logits, -jnp.inf), axis=1, keepdims=True)
        shifted = jnp.where(is_logit, logits - m, -jnp.inf)
        sumexp = jnp.sum(jnp.exp(shifted), axis=1, keepdims=True)
        out_ref[i] = shifted - jnp.log(sumexp)

        h_new = z[:, :h_pad]               # lane-aligned hidden slice
        if t_total % t_chunk != 0:
            # Time axis is zero-padded up to a multiple of t_chunk; freeze the
            # carry past the true sequence end so the final hidden is exact.
            h_new = jnp.where(c * t_chunk + i < t_total, h_new, h)
        h = h_new

    h_scr[...] = h

    @pl.when(c == pl.num_programs(1) - 1)
    def _():
        hfin_ref[...] = h


def rnn_sequence(xs, h0, params, *, use_bf16=False, t_chunk=8, batch_tiles=1):
    """Runs the RNN cell over a whole sequence in a single pallas_call.

    xs: (T, B, I), h0: (B, H); params = (w_i2o, b_i2o, w_i2h, b_i2h) in the
    PyTorch nn.Linear convention (weight: (out_features, I + H)).
    Returns (log_probs: (T, B, O), final_hidden: (B, H)).

    use_bf16    : bf16 matmul operands (MXU-native on v5e/v6e/v7x), f32
                  accumulation / bias / softmax. Validate drift for long T.
    t_chunk     : recurrence steps per grid step (fully unrolled in-kernel).
    batch_tiles : >1 splits the batch over a leading "parallel" grid axis
                  (useful on v7x megacore when the batch is large).
    """
    w_i2o, b_i2o, w_i2h, b_i2h = params
    hidden_size = w_i2h.shape[0]
    output_size = w_i2o.shape[0]
    fan_in = w_i2h.shape[1]
    input_size = fan_in - hidden_size
    T, B, _ = xs.shape

    compute_dtype = jnp.bfloat16 if use_bf16 else jnp.float32
    sublane = 16 if use_bf16 else 8        # full sublane packing per dtype

    b_pad = _round_up(max(B, sublane), sublane)
    if (batch_tiles > 1 and b_pad % batch_tiles == 0
            and (b_pad // batch_tiles) % sublane == 0):
        nb = batch_tiles
    else:
        nb = 1
    b_tile = b_pad // nb

    h_pad = _round_up(hidden_size, _LANE)
    o_pad = _round_up(output_size, _LANE)
    n_tot = h_pad + o_pad

    t_chunk = max(1, min(int(t_chunk), T))
    t_pad = _round_up(T, t_chunk)
    nc = t_pad // t_chunk

    # Split the PyTorch Linear weights (out, I+H) into x / h parts and
    # pre-transpose to [in, out]; the out dim is laid into the padded slab
    # [hidden (h_pad lanes) | logits (o_pad lanes)], each region 128-aligned.
    wx_slab = jnp.zeros((input_size, n_tot), jnp.float32)
    wx_slab = wx_slab.at[:, :hidden_size].set(w_i2h[:, :input_size].T)
    wx_slab = wx_slab.at[:, h_pad:h_pad + output_size].set(w_i2o[:, :input_size].T)

    b_slab = jnp.zeros((n_tot,), jnp.float32)
    b_slab = b_slab.at[:hidden_size].set(b_i2h)
    b_slab = b_slab.at[h_pad:h_pad + output_size].set(b_i2o)

    wh_slab = jnp.zeros((h_pad, n_tot), jnp.float32)
    wh_slab = wh_slab.at[:hidden_size, :hidden_size].set(w_i2h[:, input_size:].T)
    wh_slab = wh_slab.at[:hidden_size, h_pad:h_pad + output_size].set(
        w_i2o[:, input_size:].T)
    wh_slab = wh_slab.astype(compute_dtype)

    # Hoisted input projection: one big GEMM over all T*B rows. It does not
    # depend on the recurrence, so it runs off the serial critical path with
    # M = T*B instead of a per-step M = b_pad matmul inside the kernel.
    prec = None if use_bf16 else jax.lax.Precision.HIGHEST
    xproj = jnp.dot(xs.reshape(T * B, input_size).astype(compute_dtype),
                    wx_slab.astype(compute_dtype),
                    preferred_element_type=jnp.float32,
                    precision=prec) + b_slab
    xproj = xproj.reshape(T, B, n_tot)
    xproj_p = jnp.zeros((t_pad, b_pad, n_tot), jnp.float32).at[:T, :B].set(xproj)

    h0_p = jnp.zeros((b_pad, h_pad), jnp.float32).at[:B, :hidden_size].set(h0)

    kernel = functools.partial(_rnn_seq_kernel, output_size=output_size,
                               t_chunk=t_chunk, t_total=T, h_pad=h_pad)

    # Explicit scoped-VMEM budget (defaults: 16 MiB v5e / 32 MiB v6e+v7x);
    # generous headroom but capped well under v7x's 64 MiB physical VMEM.
    wh_bytes = h_pad * n_tot * (2 if use_bf16 else 4)
    est = (2 * t_chunk * b_tile * n_tot * 4      # xproj blocks (double-buffered)
           + 2 * t_chunk * b_tile * o_pad * 4    # output blocks
           + 2 * wh_bytes                        # resident recurrent weight
           + 5 * b_tile * h_pad * 4)             # h0 + final hidden + carry
    vmem_limit = int(min(max(2 * est + (2 << 20), 8 << 20), 48 << 20))

    out_slab, hfin = pl.pallas_call(
        kernel,
        out_shape=(
            jax.ShapeDtypeStruct((t_pad, b_pad, o_pad), jnp.float32),
            jax.ShapeDtypeStruct((b_pad, h_pad), jnp.float32),
        ),
        grid_spec=pltpu.PrefetchScalarGridSpec(
            num_scalar_prefetch=0,
            grid=(nb, nc),
            in_specs=[
                pl.BlockSpec((t_chunk, b_tile, n_tot), lambda b, c: (c, b, 0)),
                pl.BlockSpec((b_tile, h_pad), lambda b, c: (b, 0)),
                pl.BlockSpec((h_pad, n_tot), lambda b, c: (0, 0)),  # resident Wh
            ],
            out_specs=[
                pl.BlockSpec((t_chunk, b_tile, o_pad), lambda b, c: (c, b, 0)),
                pl.BlockSpec((b_tile, h_pad), lambda b, c: (b, 0)),
            ],
            scratch_shapes=[pltpu.VMEM((b_tile, h_pad), jnp.float32)],
        ),
        compiler_params=pltpu.CompilerParams(
            # Batch tiles are independent ("parallel", v7x megacore); the time
            # chunk axis carries the hidden state and must stay sequential.
            dimension_semantics=("parallel", "arbitrary"),
            vmem_limit_bytes=vmem_limit,
        ),
    )(xproj_p, h0_p, wh_slab)

    log_probs = out_slab[:T, :B, :output_size]
    final_hidden = hfin[:B, :hidden_size]
    return log_probs, final_hidden


def rnn_forward(input_data, hidden, params, *, use_bf16=False):
    """One RNN step, matching the PyTorch module's forward(input, hidden)."""
    log_probs, new_hidden = rnn_sequence(input_data[None], hidden, params,
                                         use_bf16=use_bf16, t_chunk=1)
    return log_probs[0], new_hidden


def init_params(key, input_size, hidden_size, output_size):
    """Deterministic params matching nn.Linear shapes (uniform +/- 1/sqrt(fan_in))."""
    k1, k2, k3, k4 = jax.random.split(key, 4)
    fan_in = input_size + hidden_size
    bound = 1.0 / (fan_in ** 0.5)
    w_i2o = jax.random.uniform(k1, (output_size, fan_in), jnp.float32, -bound, bound)
    b_i2o = jax.random.uniform(k2, (output_size,), jnp.float32, -bound, bound)
    w_i2h = jax.random.uniform(k3, (hidden_size, fan_in), jnp.float32, -bound, bound)
    b_i2h = jax.random.uniform(k4, (hidden_size,), jnp.float32, -bound, bound)
    return (w_i2o, b_i2o, w_i2h, b_i2h)


if __name__ == "__main__":
    B, I, H, O, T = 2, 16, 32, 8, 8
    key = jax.random.PRNGKey(0)
    kx, kp = jax.random.split(key, 2)

    xs = jax.random.normal(kx, (T, B, I), jnp.float32)
    h0 = jnp.zeros((B, H), jnp.float32)      # mirrors init_hidden (broadcast to batch)
    params = init_params(kp, I, H, O)

    seq_fn = jax.jit(rnn_sequence,
                     static_argnames=("use_bf16", "t_chunk", "batch_tiles"))
    step_fn = jax.jit(rnn_forward, static_argnames=("use_bf16",))

    # fused full-sequence run (main optimized path)
    outs, hid = seq_fn(xs, h0, params)
    jax.block_until_ready((outs, hid))

    # plain-JAX reference (unrolled module semantics)
    w_i2o, b_i2o, w_i2h, b_i2h = params
    h_ref = h0
    ref_outs = []
    for t in range(T):
        comb = jnp.concatenate([xs[t], h_ref], axis=1)
        ref_outs.append(jax.nn.log_softmax(comb @ w_i2o.T + b_i2o, axis=1))
        h_ref = comb @ w_i2h.T + b_i2h
    ref_outs = jnp.stack(ref_outs)
    assert jnp.allclose(outs, ref_outs, atol=2e-4), "sequence output mismatch"
    assert jnp.allclose(hid, h_ref, atol=2e-4), "sequence hidden mismatch"

    # time-chunk padding path (T not a multiple of t_chunk)
    outs_c, hid_c = seq_fn(xs, h0, params, t_chunk=3)
    jax.block_until_ready((outs_c, hid_c))
    assert jnp.allclose(outs_c, ref_outs, atol=2e-4), "chunked output mismatch"
    assert jnp.allclose(hid_c, h_ref, atol=2e-4), "chunked hidden mismatch"

    # single step, exactly the module's forward()
    out1, hid1 = step_fn(xs[0], h0, params)
    jax.block_until_ready((out1, hid1))
    comb0 = jnp.concatenate([xs[0], h0], axis=1)
    assert jnp.allclose(out1, jax.nn.log_softmax(comb0 @ w_i2o.T + b_i2o, axis=1),
                        atol=2e-4), "single-step output mismatch"
    assert jnp.allclose(hid1, comb0 @ w_i2h.T + b_i2h, atol=2e-4), \
        "single-step hidden mismatch"

    # bf16 matmul-operand path (f32 accumulation/softmax; fine on v5e as well)
    outs_bf, hid_bf = seq_fn(xs, h0, params, use_bf16=True)
    jax.block_until_ready((outs_bf, hid_bf))
    assert jnp.allclose(outs_bf, ref_outs, atol=0.1), "bf16 output drifted"

    print("KERNEL_OK")
</pallas_src>

<mosaic_0001>
module attributes {stable_mosaic.version = 11 : i64} {
  func.func @_rnn_seq_kernel(%arg0: i32, %arg1: i32, %arg2: memref<8x8x256xf32, #tpu.memory_space<vmem>>, %arg3: memref<8x128xf32, #tpu.memory_space<vmem>>, %arg4: memref<128x256xf32, #tpu.memory_space<vmem>>, %arg5: memref<8x8x128xf32, #tpu.memory_space<vmem>>, %arg6: memref<8x128xf32, #tpu.memory_space<vmem>>, %arg7: memref<8x128xf32, #tpu.memory_space<vmem>>) attributes {dimension_semantics = [#tpu.dimension_semantics<parallel>, #tpu.dimension_semantics<arbitrary>], iteration_bounds = array<i64: 1, 1>, scalar_prefetch = 0 : i64, scratch_operands = 1 : i64, tpu.core_type = #tpu.core_type<tc>, window_params = [{transform_indices = @transform_0, window_bounds = array<i64: 8, 8, 256>}, {transform_indices = @transform_1, window_bounds = array<i64: 8, 128>}, {pipeline_mode = #tpu.pipeline_mode<synchronous>, transform_indices = @transform_2, window_bounds = array<i64: 128, 256>}, {transform_indices = @transform_3, window_bounds = array<i64: 8, 8, 128>}, {transform_indices = @transform_4, window_bounds = array<i64: 8, 128>}]} {
    %c0_i32 = arith.constant 0 : i32
    %0 = arith.cmpi eq, %arg1, %c0_i32 : i32
    %1 = arith.extui %0 : i1 to i32
    %c0_i32_0 = arith.constant 0 : i32
    %2 = arith.cmpi ne, %1, %c0_i32_0 : i32
    scf.if %2 {
      %c0_88 = arith.constant 0 : index
      %c0_89 = arith.constant 0 : index
      %196 = vector.load %arg3[%c0_88, %c0_89] : memref<8x128xf32, #tpu.memory_space<vmem>>, vector<8x128xf32>
      %c0_90 = arith.constant 0 : index
      %c0_91 = arith.constant 0 : index
      %197 = vector.load %arg7[%c0_90, %c0_91] : memref<8x128xf32, #tpu.memory_space<vmem>>, vector<8x128xf32>
      tpu.vector_store %arg7[%c0_90, %c0_91], %196 {strides = array<i32>} : memref<8x128xf32, #tpu.memory_space<vmem>>, vector<8x128xf32>,
    } else {
    }
    %c0 = arith.constant 0 : index
    %c0_1 = arith.constant 0 : index
    %3 = vector.load %arg4[%c0, %c0_1] : memref<128x256xf32, #tpu.memory_space<vmem>>, vector<128x256xf32>
    %4 = tpu.iota {dimensions = array<i32: 1>} : vector<8x128xi32>
    %c8_i32 = arith.constant 8 : i32
    %5 = vector.broadcast %c8_i32 : i32 to vector<8x128xi32>
    %6 = arith.cmpi slt, %4, %5 : vector<8x128xi32>
    %c0_2 = arith.constant 0 : index
    %c0_3 = arith.constant 0 : index
    %7 = vector.load %arg7[%c0_2, %c0_3] : memref<8x128xf32, #tpu.memory_space<vmem>>, vector<8x128xf32>
    %c0_4 = arith.constant 0 : index
    %c0_5 = arith.constant 0 : index
    %c0_6 = arith.constant 0 : index
    %8 = vector.load %arg2[%c0_4, %c0_5, %c0_6] : memref<8x8x256xf32, #tpu.memory_space<vmem>>, vector<1x8x256xf32>
    %9 = vector.shape_cast %8 : vector<1x8x256xf32> to vector<8x256xf32>
    %cst = arith.constant dense<0.000000e+00> : vector<8x256xf32>
    %10 = tpu.matmul %7, %3, %cst {dimension_numbers = #tpu.dot_dimension_numbers<[1], [0], [0], [1], [0, 0, 1, 1], [], []>} : vector<8x128xf32>, vector<128x256xf32>, vector<8x256xf32> -> vector<8x256xf32>
    %11 = arith.addf %9, %10 : vector<8x256xf32>
    %12 = vector.extract_strided_slice %11 {offsets = [0, 128], sizes = [8, 128], strides = [1, 1]} : vector<8x256xf32> to vector<8x128xf32>
    %cst_7 = arith.constant 0xFF800000 : f32
    %13 = vector.broadcast %cst_7 : f32 to vector<8x128xf32>
    %14 = arith.select %6, %12, %13 : vector<8x128xi1>, vector<8x128xf32>
    %cst_8 = arith.constant dense<0xFF800000> : vector<8xf32>
    %15 = vector.multi_reduction <maximumf>, %14, %cst_8 [1] : vector<8x128xf32> to vector<8xf32>
    %16 = vector.shape_cast %15 : vector<8xf32> to vector<8x1xf32>
    %17 = vector.broadcast %16 : vector<8x1xf32> to vector<8x128xf32>
    %18 = arith.subf %12, %17 : vector<8x128xf32>
    %cst_9 = arith.constant 0xFF800000 : f32
    %19 = vector.broadcast %cst_9 : f32 to vector<8x128xf32>
    %20 = arith.select %6, %18, %19 : vector<8x128xi1>, vector<8x128xf32>
    %21 = math.exp %20 : vector<8x128xf32>
    %cst_10 = arith.constant dense<0.000000e+00> : vector<8xf32>
    %22 = vector.multi_reduction <add>, %21, %cst_10 [1] : vector<8x128xf32> to vector<8xf32>
    %23 = vector.shape_cast %22 : vector<8xf32> to vector<8x1xf32>
    %24 = math.log %23 : vector<8x1xf32>
    %25 = vector.broadcast %24 : vector<8x1xf32> to vector<8x128xf32>
    %26 = arith.subf %20, %25 : vector<8x128xf32>
    %c0_11 = arith.constant 0 : index
    %c0_12 = arith.constant 0 : index
    %c0_13 = arith.constant 0 : index
    %27 = vector.load %arg5[%c0_11, %c0_12, %c0_13] : memref<8x8x128xf32, #tpu.memory_space<vmem>>, vector<1x8x128xf32>
    %28 = vector.shape_cast %27 : vector<1x8x128xf32> to vector<8x128xf32>
    %29 = vector.shape_cast %26 : vector<8x128xf32> to vector<1x8x128xf32>
    tpu.vector_store %arg5[%c0_11, %c0_12, %c0_13], %29 {strides = array<i32>} : memref<8x8x128xf32, #tpu.memory_space<vmem>>, vector<1x8x128xf32>,
    %30 = vector.extract_strided_slice %11 {offsets = [0, 0], sizes = [8, 128], strides = [1, 1]} : vector<8x256xf32> to vector<8x128xf32>
    %c1 = arith.constant 1 : index
    %c0_14 = arith.constant 0 : index
    %c0_15 = arith.constant 0 : index
    %31 = vector.load %arg2[%c1, %c0_14, %c0_15] : memref<8x8x256xf32, #tpu.memory_space<vmem>>, vector<1x8x256xf32>
    %32 = vector.shape_cast %31 : vector<1x8x256xf32> to vector<8x256xf32>
    %cst_16 = arith.constant dense<0.000000e+00> : vector<8x256xf32>
    %33 = tpu.matmul %30, %3, %cst_16 {dimension_numbers = #tpu.dot_dimension_numbers<[1], [0], [0], [1], [0, 0, 1, 1], [], []>} : vector<8x128xf32>, vector<128x256xf32>, vector<8x256xf32> -> vector<8x256xf32>
    %34 = arith.addf %32, %33 : vector<8x256xf32>
    %35 = vector.extract_strided_slice %34 {offsets = [0, 128], sizes = [8, 128], strides = [1, 1]} : vector<8x256xf32> to vector<8x128xf32>
    %cst_17 = arith.constant 0xFF800000 : f32
    %36 = vector.broadcast %cst_17 : f32 to vector<8x128xf32>
    %37 = arith.select %6, %35, %36 : vector<8x128xi1>, vector<8x128xf32>
    %cst_18 = arith.constant dense<0xFF800000> : vector<8xf32>
    %38 = vector.multi_reduction <maximumf>, %37, %cst_18 [1] : vector<8x128xf32> to vector<8xf32>
    %39 = vector.shape_cast %38 : vector<8xf32> to vector<8x1xf32>
    %40 = vector.broadcast %39 : vector<8x1xf32> to vector<8x128xf32>
    %41 = arith.subf %35, %40 : vector<8x128xf32>
    %cst_19 = arith.constant 0xFF800000 : f32
    %42 = vector.broadcast %cst_19 : f32 to vector<8x128xf32>
    %43 = arith.select %6, %41, %42 : vector<8x128xi1>, vector<8x128xf32>
    %44 = math.exp %43 : vector<8x128xf32>
    %cst_20 = arith.constant dense<0.000000e+00> : vector<8xf32>
    %45 = vector.multi_reduction <add>, %44, %cst_20 [1] : vector<8x128xf32> to vector<8xf32>
    %46 = vector.shape_cast %45 : vector<8xf32> to vector<8x1xf32>
    %47 = math.log %46 : vector<8x1xf32>
    %48 = vector.broadcast %47 : vector<8x1xf32> to vector<8x128xf32>
    %49 = arith.subf %43, %48 : vector<8x128xf32>
    %c1_21 = arith.constant 1 : index
    %c0_22 = arith.constant 0 : index
    %c0_23 = arith.constant 0 : index
    %50 = vector.load %arg5[%c1_21, %c0_22, %c0_23] : memref<8x8x128xf32, #tpu.memory_space<vmem>>, vector<1x8x128xf32>
    %51 = vector.shape_cast %50 : vector<1x8x128xf32> to vector<8x128xf32>
    %52 = vector.shape_cast %49 : vector<8x128xf32> to vector<1x8x128xf32>
    tpu.vector_store %arg5[%c1_21, %c0_22, %c0_23], %52 {strides = array<i32>} : memref<8x8x128xf32, #tpu.memory_space<vmem>>, vector<1x8x128xf32>,
    %53 = vector.extract_strided_slice %34 {offsets = [0, 0], sizes = [8, 128], strides = [1, 1]} : vector<8x256xf32> to vector<8x128xf32>
    %c2 = arith.constant 2 : index
    %c0_24 = arith.constant 0 : index
    %c0_25 = arith.constant 0 : index
    %54 = vector.load %arg2[%c2, %c0_24, %c0_25] : memref<8x8x256xf32, #tpu.memory_space<vmem>>, vector<1x8x256xf32>
    %55 = vector.shape_cast %54 : vector<1x8x256xf32> to vector<8x256xf32>
    %cst_26 = arith.constant dense<0.000000e+00> : vector<8x256xf32>
    %56 = tpu.matmul %53, %3, %cst_26 {dimension_numbers = #tpu.dot_dimension_numbers<[1], [0], [0], [1], [0, 0, 1, 1], [], []>} : vector<8x128xf32>, vector<128x256xf32>, vector<8x256xf32> -> vector<8x256xf32>
    %57 = arith.addf %55, %56 : vector<8x256xf32>
    %58 = vector.extract_strided_slice %57 {offsets = [0, 128], sizes = [8, 128], strides = [1, 1]} : vector<8x256xf32> to vector<8x128xf32>
    %cst_27 = arith.constant 0xFF800000 : f32
    %59 = vector.broadcast %cst_27 : f32 to vector<8x128xf32>
    %60 = arith.select %6, %58, %59 : vector<8x128xi1>, vector<8x128xf32>
    %cst_28 = arith.constant dense<0xFF800000> : vector<8xf32>
    %61 = vector.multi_reduction <maximumf>, %60, %cst_28 [1] : vector<8x128xf32> to vector<8xf32>
    %62 = vector.shape_cast %61 : vector<8xf32> to vector<8x1xf32>
    %63 = vector.broadcast %62 : vector<8x1xf32> to vector<8x128xf32>
    %64 = arith.subf %58, %63 : vector<8x128xf32>
    %cst_29 = arith.constant 0xFF800000 : f32
    %65 = vector.broadcast %cst_29 : f32 to vector<8x128xf32>
    %66 = arith.select %6, %64, %65 : vector<8x128xi1>, vector<8x128xf32>
    %67 = math.exp %66 : vector<8x128xf32>
    %cst_30 = arith.constant dense<0.000000e+00> : vector<8xf32>
    %68 = vector.multi_reduction <add>, %67, %cst_30 [1] : vector<8x128xf32> to vector<8xf32>
    %69 = vector.shape_cast %68 : vector<8xf32> to vector<8x1xf32>
    %70 = math.log %69 : vector<8x1xf32>
    %71 = vector.broadcast %70 : vector<8x1xf32> to vector<8x128xf32>
    %72 = arith.subf %66, %71 : vector<8x128xf32>
    %c2_31 = arith.constant 2 : index
    %c0_32 = arith.constant 0 : index
    %c0_33 = arith.constant 0 : index
    %73 = vector.load %arg5[%c2_31, %c0_32, %c0_33] : memref<8x8x128xf32, #tpu.memory_space<vmem>>, vector<1x8x128xf32>
    %74 = vector.shape_cast %73 : vector<1x8x128xf32> to vector<8x128xf32>
    %75 = vector.shape_cast %72 : vector<8x128xf32> to vector<1x8x128xf32>
    tpu.vector_store %arg5[%c2_31, %c0_32, %c0_33], %75 {strides = array<i32>} : memref<8x8x128xf32, #tpu.memory_space<vmem>>, vector<1x8x128xf32>,
    %76 = vector.extract_strided_slice %57 {offsets = [0, 0], sizes = [8, 128], strides = [1, 1]} : vector<8x256xf32> to vector<8x128xf32>
    %c3 = arith.constant 3 : index
    %c0_34 = arith.constant 0 : index
    %c0_35 = arith.constant 0 : index
    %77 = vector.load %arg2[%c3, %c0_34, %c0_35] : memref<8x8x256xf32, #tpu.memory_space<vmem>>, vector<1x8x256xf32>
    %78 = vector.shape_cast %77 : vector<1x8x256xf32> to vector<8x256xf32>
    %cst_36 = arith.constant dense<0.000000e+00> : vector<8x256xf32>
    %79 = tpu.matmul %76, %3, %cst_36 {dimension_numbers = #tpu.dot_dimension_numbers<[1], [0], [0], [1], [0, 0, 1, 1], [], []>} : vector<8x128xf32>, vector<128x256xf32>, vector<8x256xf32> -> vector<8x256xf32>
    %80 = arith.addf %78, %79 : vector<8x256xf32>
    %81 = vector.extract_strided_slice %80 {offsets = [0, 128], sizes = [8, 128], strides = [1, 1]} : vector<8x256xf32> to vector<8x128xf32>
    %cst_37 = arith.constant 0xFF800000 : f32
    %82 = vector.broadcast %cst_37 : f32 to vector<8x128xf32>
    %83 = arith.select %6, %81, %82 : vector<8x128xi1>, vector<8x128xf32>
    %cst_38 = arith.constant dense<0xFF800000> : vector<8xf32>
    %84 = vector.multi_reduction <maximumf>, %83, %cst_38 [1] : vector<8x128xf32> to vector<8xf32>
    %85 = vector.shape_cast %84 : vector<8xf32> to vector<8x1xf32>
    %86 = vector.broadcast %85 : vector<8x1xf32> to vector<8x128xf32>
    %87 = arith.subf %81, %86 : vector<8x128xf32>
    %cst_39 = arith.constant 0xFF800000 : f32
    %88 = vector.broadcast %cst_39 : f32 to vector<8x128xf32>
    %89 = arith.select %6, %87, %88 : vector<8x128xi1>, vector<8x128xf32>
    %90 = math.exp %89 : vector<8x128xf32>
    %cst_40 = arith.constant dense<0.000000e+00> : vector<8xf32>
    %91 = vector.multi_reduction <add>, %90, %cst_40 [1] : vector<8x128xf32> to vector<8xf32>
    %92 = vector.shape_cast %91 : vector<8xf32> to vector<8x1xf32>
    %93 = math.log %92 : vector<8x1xf32>
    %94 = vector.broadcast %93 : vector<8x1xf32> to vector<8x128xf32>
    %95 = arith.subf %89, %94 : vector<8x128xf32>
    %c3_41 = arith.constant 3 : index
    %c0_42 = arith.constant 0 : index
    %c0_43 = arith.constant 0 : index
    %96 = vector.load %arg5[%c3_41, %c0_42, %c0_43] : memref<8x8x128xf32, #tpu.memory_space<vmem>>, vector<1x8x128xf32>
    %97 = vector.shape_cast %96 : vector<1x8x128xf32> to vector<8x128xf32>
    %98 = vector.shape_cast %95 : vector<8x128xf32> to vector<1x8x128xf32>
    tpu.vector_store %arg5[%c3_41, %c0_42, %c0_43], %98 {strides = array<i32>} : memref<8x8x128xf32, #tpu.memory_space<vmem>>, vector<1x8x128xf32>,
    %99 = vector.extract_strided_slice %80 {offsets = [0, 0], sizes = [8, 128], strides = [1, 1]} : vector<8x256xf32> to vector<8x128xf32>
    %c4 = arith.constant 4 : index
    %c0_44 = arith.constant 0 : index
    %c0_45 = arith.constant 0 : index
    %100 = vector.load %arg2[%c4, %c0_44, %c0_45] : memref<8x8x256xf32, #tpu.memory_space<vmem>>, vector<1x8x256xf32>
    %101 = vector.shape_cast %100 : vector<1x8x256xf32> to vector<8x256xf32>
    %cst_46 = arith.constant dense<0.000000e+00> : vector<8x256xf32>
    %102 = tpu.matmul %99, %3, %cst_46 {dimension_numbers = #tpu.dot_dimension_numbers<[1], [0], [0], [1], [0, 0, 1, 1], [], []>} : vector<8x128xf32>, vector<128x256xf32>, vector<8x256xf32> -> vector<8x256xf32>
    %103 = arith.addf %101, %102 : vector<8x256xf32>
    %104 = vector.extract_strided_slice %103 {offsets = [0, 128], sizes = [8, 128], strides = [1, 1]} : vector<8x256xf32> to vector<8x128xf32>
    %cst_47 = arith.constant 0xFF800000 : f32
    %105 = vector.broadcast %cst_47 : f32 to vector<8x128xf32>
    %106 = arith.select %6, %104, %105 : vector<8x128xi1>, vector<8x128xf32>
    %cst_48 = arith.constant dense<0xFF800000> : vector<8xf32>
    %107 = vector.multi_reduction <maximumf>, %106, %cst_48 [1] : vector<8x128xf32> to vector<8xf32>
    %108 = vector.shape_cast %107 : vector<8xf32> to vector<8x1xf32>
    %109 = vector.broadcast %108 : vector<8x1xf32> to vector<8x128xf32>
    %110 = arith.subf %104, %109 : vector<8x128xf32>
    %cst_49 = arith.constant 0xFF800000 : f32
    %111 = vector.broadcast %cst_49 : f32 to vector<8x128xf32>
    %112 = arith.select %6, %110, %111 : vector<8x128xi1>, vector<8x128xf32>
    %113 = math.exp %112 : vector<8x128xf32>
    %cst_50 = arith.constant dense<0.000000e+00> : vector<8xf32>
    %114 = vector.multi_reduction <add>, %113, %cst_50 [1] : vector<8x128xf32> to vector<8xf32>
    %115 = vector.shape_cast %114 : vector<8xf32> to vector<8x1xf32>
    %116 = math.log %115 : vector<8x1xf32>
    %117 = vector.broadcast %116 : vector<8x1xf32> to vector<8x128xf32>
    %118 = arith.subf %112, %117 : vector<8x128xf32>
    %c4_51 = arith.constant 4 : index
    %c0_52 = arith.constant 0 : index
    %c0_53 = arith.constant 0 : index
    %119 = vector.load %arg5[%c4_51, %c0_52, %c0_53] : memref<8x8x128xf32, #tpu.memory_space<vmem>>, vector<1x8x128xf32>
    %120 = vector.shape_cast %119 : vector<1x8x128xf32> to vector<8x128xf32>
    %121 = vector.shape_cast %118 : vector<8x128xf32> to vector<1x8x128xf32>
    tpu.vector_store %arg5[%c4_51, %c0_52, %c0_53], %121 {strides = array<i32>} : memref<8x8x128xf32, #tpu.memory_space<vmem>>, vector<1x8x128xf32>,
    %122 = vector.extract_strided_slice %103 {offsets = [0, 0], sizes = [8, 128], strides = [1, 1]} : vector<8x256xf32> to vector<8x128xf32>
    %c5 = arith.constant 5 : index
    %c0_54 = arith.constant 0 : index
    %c0_55 = arith.constant 0 : index
    %123 = vector.load %arg2[%c5, %c0_54, %c0_55] : memref<8x8x256xf32, #tpu.memory_space<vmem>>, vector<1x8x256xf32>
    %124 = vector.shape_cast %123 : vector<1x8x256xf32> to vector<8x256xf32>
    %cst_56 = arith.constant dense<0.000000e+00> : vector<8x256xf32>
    %125 = tpu.matmul %122, %3, %cst_56 {dimension_numbers = #tpu.dot_dimension_numbers<[1], [0], [0], [1], [0, 0, 1, 1], [], []>} : vector<8x128xf32>, vector<128x256xf32>, vector<8x256xf32> -> vector<8x256xf32>
    %126 = arith.addf %124, %125 : vector<8x256xf32>
    %127 = vector.extract_strided_slice %126 {offsets = [0, 128], sizes = [8, 128], strides = [1, 1]} : vector<8x256xf32> to vector<8x128xf32>
    %cst_57 = arith.constant 0xFF800000 : f32
    %128 = vector.broadcast %cst_57 : f32 to vector<8x128xf32>
    %129 = arith.select %6, %127, %128 : vector<8x128xi1>, vector<8x128xf32>
    %cst_58 = arith.constant dense<0xFF800000> : vector<8xf32>
    %130 = vector.multi_reduction <maximumf>, %129, %cst_58 [1] : vector<8x128xf32> to vector<8xf32>
    %131 = vector.shape_cast %130 : vector<8xf32> to vector<8x1xf32>
    %132 = vector.broadcast %131 : vector<8x1xf32> to vector<8x128xf32>
    %133 = arith.subf %127, %132 : vector<8x128xf32>
    %cst_59 = arith.constant 0xFF800000 : f32
    %134 = vector.broadcast %cst_59 : f32 to vector<8x128xf32>
    %135 = arith.select %6, %133, %134 : vector<8x128xi1>, vector<8x128xf32>
    %136 = math.exp %135 : vector<8x128xf32>
    %cst_60 = arith.constant dense<0.000000e+00> : vector<8xf32>
    %137 = vector.multi_reduction <add>, %136, %cst_60 [1] : vector<8x128xf32> to vector<8xf32>
    %138 = vector.shape_cast %137 : vector<8xf32> to vector<8x1xf32>
    %139 = math.log %138 : vector<8x1xf32>
    %140 = vector.broadcast %139 : vector<8x1xf32> to vector<8x128xf32>
    %141 = arith.subf %135, %140 : vector<8x128xf32>
    %c5_61 = arith.constant 5 : index
    %c0_62 = arith.constant 0 : index
    %c0_63 = arith.constant 0 : index
    %142 = vector.load %arg5[%c5_61, %c0_62, %c0_63] : memref<8x8x128xf32, #tpu.memory_space<vmem>>, vector<1x8x128xf32>
    %143 = vector.shape_cast %142 : vector<1x8x128xf32> to vector<8x128xf32>
    %144 = vector.shape_cast %141 : vector<8x128xf32> to vector<1x8x128xf32>
    tpu.vector_store %arg5[%c5_61, %c0_62, %c0_63], %144 {strides = array<i32>} : memref<8x8x128xf32, #tpu.memory_space<vmem>>, vector<1x8x128xf32>,
    %145 = vector.extract_strided_slice %126 {offsets = [0, 0], sizes = [8, 128], strides = [1, 1]} : vector<8x256xf32> to vector<8x128xf32>
    %c6 = arith.constant 6 : index
    %c0_64 = arith.constant 0 : index
    %c0_65 = arith.constant 0 : index
    %146 = vector.load %arg2[%c6, %c0_64, %c0_65] : memref<8x8x256xf32, #tpu.memory_space<vmem>>, vector<1x8x256xf32>
    %147 = vector.shape_cast %146 : vector<1x8x256xf32> to vector<8x256xf32>
    %cst_66 = arith.constant dense<0.000000e+00> : vector<8x256xf32>
    %148 = tpu.matmul %145, %3, %cst_66 {dimension_numbers = #tpu.dot_dimension_numbers<[1], [0], [0], [1], [0, 0, 1, 1], [], []>} : vector<8x128xf32>, vector<128x256xf32>, vector<8x256xf32> -> vector<8x256xf32>
    %149 = arith.addf %147, %148 : vector<8x256xf32>
    %150 = vector.extract_strided_slice %149 {offsets = [0, 128], sizes = [8, 128], strides = [1, 1]} : vector<8x256xf32> to vector<8x128xf32>
    %cst_67 = arith.constant 0xFF800000 : f32
    %151 = vector.broadcast %cst_67 : f32 to vector<8x128xf32>
    %152 = arith.select %6, %150, %151 : vector<8x128xi1>, vector<8x128xf32>
    %cst_68 = arith.constant dense<0xFF800000> : vector<8xf32>
    %153 = vector.multi_reduction <maximumf>, %152, %cst_68 [1] : vector<8x128xf32> to vector<8xf32>
    %154 = vector.shape_cast %153 : vector<8xf32> to vector<8x1xf32>
    %155 = vector.broadcast %154 : vector<8x1xf32> to vector<8x128xf32>
    %156 = arith.subf %150, %155 : vector<8x128xf32>
    %cst_69 = arith.constant 0xFF800000 : f32
    %157 = vector.broadcast %cst_69 : f32 to vector<8x128xf32>
    %158 = arith.select %6, %156, %157 : vector<8x128xi1>, vector<8x128xf32>
    %159 = math.exp %158 : vector<8x128xf32>
    %cst_70 = arith.constant dense<0.000000e+00> : vector<8xf32>
    %160 = vector.multi_reduction <add>, %159, %cst_70 [1] : vector<8x128xf32> to vector<8xf32>
    %161 = vector.shape_cast %160 : vector<8xf32> to vector<8x1xf32>
    %162 = math.log %161 : vector<8x1xf32>
    %163 = vector.broadcast %162 : vector<8x1xf32> to vector<8x128xf32>
    %164 = arith.subf %158, %163 : vector<8x128xf32>
    %c6_71 = arith.constant 6 : index
    %c0_72 = arith.constant 0 : index
    %c0_73 = arith.constant 0 : index
    %165 = vector.load %arg5[%c6_71, %c0_72, %c0_73] : memref<8x8x128xf32, #tpu.memory_space<vmem>>, vector<1x8x128xf32>
    %166 = vector.shape_cast %165 : vector<1x8x128xf32> to vector<8x128xf32>
    %167 = vector.shape_cast %164 : vector<8x128xf32> to vector<1x8x128xf32>
    tpu.vector_store %arg5[%c6_71, %c0_72, %c0_73], %167 {strides = array<i32>} : memref<8x8x128xf32, #tpu.memory_space<vmem>>, vector<1x8x128xf32>,
    %168 = vector.extract_strided_slice %149 {offsets = [0, 0], sizes = [8, 128], strides = [1, 1]} : vector<8x256xf32> to vector<8x128xf32>
    %c7 = arith.constant 7 : index
    %c0_74 = arith.constant 0 : index
    %c0_75 = arith.constant 0 : index
    %169 = vector.load %arg2[%c7, %c0_74, %c0_75] : memref<8x8x256xf32, #tpu.memory_space<vmem>>, vector<1x8x256xf32>
    %170 = vector.shape_cast %169 : vector<1x8x256xf32> to vector<8x256xf32>
    %cst_76 = arith.constant dense<0.000000e+00> : vector<8x256xf32>
    %171 = tpu.matmul %168, %3, %cst_76 {dimension_numbers = #tpu.dot_dimension_numbers<[1], [0], [0], [1], [0, 0, 1, 1], [], []>} : vector<8x128xf32>, vector<128x256xf32>, vector<8x256xf32> -> vector<8x256xf32>
    %172 = arith.addf %170, %171 : vector<8x256xf32>
    %173 = vector.extract_strided_slice %172 {offsets = [0, 128], sizes = [8, 128], strides = [1, 1]} : vector<8x256xf32> to vector<8x128xf32>
    %cst_77 = arith.constant 0xFF800000 : f32
    %174 = vector.broadcast %cst_77 : f32 to vector<8x128xf32>
    %175 = arith.select %6, %173, %174 : vector<8x128xi1>, vector<8x128xf32>
    %cst_78 = arith.constant dense<0xFF800000> : vector<8xf32>
    %176 = vector.multi_reduction <maximumf>, %175, %cst_78 [1] : vector<8x128xf32> to vector<8xf32>
    %177 = vector.shape_cast %176 : vector<8xf32> to vector<8x1xf32>
    %178 = vector.broadcast %177 : vector<8x1xf32> to vector<8x128xf32>
    %179 = arith.subf %173, %178 : vector<8x128xf32>
    %cst_79 = arith.constant 0xFF800000 : f32
    %180 = vector.broadcast %cst_79 : f32 to vector<8x128xf32>
    %181 = arith.select %6, %179, %180 : vector<8x128xi1>, vector<8x128xf32>
    %182 = math.exp %181 : vector<8x128xf32>
    %cst_80 = arith.constant dense<0.000000e+00> : vector<8xf32>
    %183 = vector.multi_reduction <add>, %182, %cst_80 [1] : vector<8x128xf32> to vector<8xf32>
    %184 = vector.shape_cast %183 : vector<8xf32> to vector<8x1xf32>
    %185 = math.log %184 : vector<8x1xf32>
    %186 = vector.broadcast %185 : vector<8x1xf32> to vector<8x128xf32>
    %187 = arith.subf %181, %186 : vector<8x128xf32>
    %c7_81 = arith.constant 7 : index
    %c0_82 = arith.constant 0 : index
    %c0_83 = arith.constant 0 : index
    %188 = vector.load %arg5[%c7_81, %c0_82, %c0_83] : memref<8x8x128xf32, #tpu.memory_space<vmem>>, vector<1x8x128xf32>
    %189 = vector.shape_cast %188 : vector<1x8x128xf32> to vector<8x128xf32>
    %190 = vector.shape_cast %187 : vector<8x128xf32> to vector<1x8x128xf32>
    tpu.vector_store %arg5[%c7_81, %c0_82, %c0_83], %190 {strides = array<i32>} : memref<8x8x128xf32, #tpu.memory_space<vmem>>, vector<1x8x128xf32>,
    %191 = vector.extract_strided_slice %172 {offsets = [0, 0], sizes = [8, 128], strides = [1, 1]} : vector<8x256xf32> to vector<8x128xf32>
    %c0_84 = arith.constant 0 : index
    %c0_85 = arith.constant 0 : index
    %192 = vector.load %arg7[%c0_84, %c0_85] : memref<8x128xf32, #tpu.memory_space<vmem>>, vector<8x128xf32>
    tpu.vector_store %arg7[%c0_84, %c0_85], %191 {strides = array<i32>} : memref<8x128xf32, #tpu.memory_space<vmem>>, vector<8x128xf32>,
    %c0_i32_86 = arith.constant 0 : i32
    %193 = arith.cmpi eq, %arg1, %c0_i32_86 : i32
    %194 = arith.extui %193 : i1 to i32
    %c0_i32_87 = arith.constant 0 : i32
    %195 = arith.cmpi ne, %194, %c0_i32_87 : i32
    scf.if %195 {
      %c0_88 = arith.constant 0 : index
      %c0_89 = arith.constant 0 : index
      %196 = vector.load %arg6[%c0_88, %c0_89] : memref<8x128xf32, #tpu.memory_space<vmem>>, vector<8x128xf32>
      tpu.vector_store %arg6[%c0_88, %c0_89], %191 {strides = array<i32>} : memref<8x128xf32, #tpu.memory_space<vmem>>, vector<8x128xf32>,
    } else {
    }
    return
  }
  func.func @transform_0(%arg0: i32, %arg1: i32) -> (i32, i32, i32) {
    %c0_i32 = arith.constant 0 : i32
    %c0_i32_0 = arith.constant 0 : i32
    return %arg1, %arg0, %c0_i32 : i32, i32, i32
  }
  func.func @transform_1(%arg0: i32, %arg1: i32) -> (i32, i32) {
    %c0_i32 = arith.constant 0 : i32
    %c0_i32_0 = arith.constant 0 : i32
    return %arg0, %c0_i32 : i32, i32
  }
  func.func @transform_2(%arg0: i32, %arg1: i32) -> (i32, i32) {
    %c0_i32 = arith.constant 0 : i32
    %c0_i32_0 = arith.constant 0 : i32
    %c0_i32_1 = arith.constant 0 : i32
    return %c0_i32, %c0_i32_0 : i32, i32
  }
  func.func @transform_3(%arg0: i32, %arg1: i32) -> (i32, i32, i32) {
    %c0_i32 = arith.constant 0 : i32
    %c0_i32_0 = arith.constant 0 : i32
    return %arg1, %arg0, %c0_i32 : i32, i32, i32
  }
  func.func @transform_4(%arg0: i32, %arg1: i32) -> (i32, i32) {
    %c0_i32 = arith.constant 0 : i32
    %c0_i32_0 = arith.constant 0 : i32
    return %arg0, %c0_i32 : i32, i32
  }
}

</mosaic_0001>

<bundles_post_ra>
// kernel: rnn_sequence.1
= control target key start
LH: loop header
LB: loop body
LE: loop exit
PB: predicated region body
PF: predicated region fallthrough
CT: control target
= control target key end

     0   :  { %v1099_v3 = vmov 0.0   ;;  %v54_v50 = vlaneseq  ;;  %s1522_s2 = inlined_call_operand.vmem [shape: f32[128,256], index: 2, kind: input, shape index: {}]   ;;  %s1523_s1 = inlined_call_operand.vmem [shape: f32[8,128], index: 1, kind: input, shape index: {}]   ;;  %s1524_s0 = inlined_call_operand.vmem [shape: f32[8,8,256], index: 0, kind: input, shape index: {}]   ;;  %s1525_s3 = inlined_call_operand.vmem [shape: f32[8,8,128], index: 3, kind: output, shape index: {0}]   ;;  %s1526_s4 = inlined_call_operand.vmem [shape: f32[8,128], index: 4, kind: output, shape index: {1}]  }
   0x1   :  { %v23_v0 = vld [vmem:[%s1522_s2 + $0x8] sm:$0xff]  ;;  %v25_v1 = vld [vmem:[%s1522_s2 + $0x18] sm:$0xff]  ;;  %v22_v2 = vld [vmem:[%s1522_s2] sm:$0xff]  ;;  %124 = vmatprep.mubr.f32.mxu0 %v1099_v3  ;;  %213 = vmatprep.mubr.f32.mxu1 %v1099_v3 }
   0x2   :  { %v1136_v4 = vpack.c.bf16 %v25_v1, %v23_v0  ;;  %v24_v5 = vld [vmem:[%s1522_s2 + $0x10] sm:$0xff]  ;;  %v27_v6 = vld [vmem:[%s1522_s2 + $0x28] sm:$0xff]  ;;  %v29_v7 = vld [vmem:[%s1522_s2 + $0x38] sm:$0xff]  ;;  %v1309_v51 = vand.u32 127, %v54_v50 }
   0x3   :  { %v1147_v8 = vpack.c.bf16 %v24_v5, %v22_v2  ;;  %v1149_v9 = vpack.c.bf16 %v29_v7, %v27_v6  ;;  %v26_v10 = vld [vmem:[%s1522_s2 + $0x20] sm:$0xff]  ;;  %v28_v11 = vld [vmem:[%s1522_s2 + $0x30] sm:$0xff]  ;;  %v31_v12 = vld [vmem:[%s1522_s2 + $0x48] sm:$0xff] }
   0x4   :  { %811 = vmatprep.subr.bf16.mxu0 %v1136_v4  ;;  %v33_v13 = vld [vmem:[%s1522_s2 + $0x58] sm:$0xff]  ;;  %843 = vmatprep.subr.bf16.mxu1 %v1136_v4  ;;  %v1166_v14 = vpack.c.bf16 %v28_v11, %v26_v10  ;;  %v30_v16 = vld [vmem:[%s1522_s2 + $0x40] sm:$0xff]  ;;  %v32_v17 = vld [vmem:[%s1522_s2 + $0x50] sm:$0xff]  ;;  %vm56_vm0 = vcmp.lt.s32.totalorder %v1309_v51, 8 }
   0x5   :  { %813 = vmatpush1.bf16.msra.mxu0 %v1147_v8  ;;  %845 = vmatpush1.bf16.msra.mxu1 %v1147_v8  ;;  %v1170_v15 = vpack.c.bf16 %v33_v13, %v31_v12  ;;  %v35_v18 = vld [vmem:[%s1522_s2 + $0x68] sm:$0xff]  ;;  %v37_v19 = vld [vmem:[%s1522_s2 + $0x78] sm:$0xff]  ;;  %v1186_v20 = vpack.c.bf16 %v32_v17, %v30_v16  ;;  %v34_v22 = vld [vmem:[%s1522_s2 + $0x60] sm:$0xff] }
   0x6   :  { %815 = vmatprep.subr.bf16.mxu0 %v1149_v9  ;;  %847 = vmatprep.subr.bf16.mxu1 %v1149_v9  ;;  %v1190_v21 = vpack.c.bf16 %v37_v19, %v35_v18  ;;  %v36_v23 = vld [vmem:[%s1522_s2 + $0x70] sm:$0xff]  ;;  %v39_v24 = vld [vmem:[%s1522_s2 + $0x88] sm:$0xff]  ;;  %v41_v25 = vld [vmem:[%s1522_s2 + $0x98] sm:$0xff] }
   0x7   :  { %v1206_v26 = vpack.c.bf16 %v36_v23, %v34_v22  ;;  %v1210_v27 = vpack.c.bf16 %v41_v25, %v39_v24  ;;  %v38_v28 = vld [vmem:[%s1522_s2 + $0x80] sm:$0xff]  ;;  %v40_v29 = vld [vmem:[%s1522_s2 + $0x90] sm:$0xff]  ;;  %v43_v30 = vld [vmem:[%s1522_s2 + $0xa8] sm:$0xff] }
   0x8   :  { %v45_v31 = vld [vmem:[%s1522_s2 + $0xb8] sm:$0xff]  ;;  %v1226_v32 = vpack.c.bf16 %v40_v29, %v38_v28  ;;  %v42_v34 = vld [vmem:[%s1522_s2 + $0xa0] sm:$0xff]  ;;  %v44_v35 = vld [vmem:[%s1522_s2 + $0xb0] sm:$0xff] }
   0x9   :  { %817 = vmatpush1.bf16.msra.mxu0 %v1166_v14  ;;  %849 = vmatpush1.bf16.msra.mxu1 %v1166_v14  ;;  %v1230_v33 = vpack.c.bf16 %v45_v31, %v43_v30  ;;  %v47_v36 = vld [vmem:[%s1522_s2 + $0xc8] sm:$0xff]  ;;  %v49_v37 = vld [vmem:[%s1522_s2 + $0xd8] sm:$0xff]  ;;  %v1246_v38 = vpack.c.bf16 %v44_v35, %v42_v34  ;;  %v46_v40 = vld [vmem:[%s1522_s2 + $0xc0] sm:$0xff] }
   0xa   :  { %819 = vmatprep.subr.bf16.mxu0 %v1170_v15  ;;  %851 = vmatprep.subr.bf16.mxu1 %v1170_v15  ;;  %v1250_v39 = vpack.c.bf16 %v49_v37, %v47_v36  ;;  %v48_v41 = vld [vmem:[%s1522_s2 + $0xd0] sm:$0xff]  ;;  %v51_v42 = vld [vmem:[%s1522_s2 + $0xe8] sm:$0xff]  ;;  %v53_v43 = vld [vmem:[%s1522_s2 + $0xf8] sm:$0xff] }
   0xb   :  { %v1266_v44 = vpack.c.bf16 %v48_v41, %v46_v40  ;;  %v1270_v45 = vpack.c.bf16 %v53_v43, %v51_v42  ;;  %v50_v46 = vld [vmem:[%s1522_s2 + $0xe0] sm:$0xff]  ;;  %v52_v47 = vld [vmem:[%s1522_s2 + $0xf0] sm:$0xff]  ;;  %v59_v53 = vld [vmem:[%s1524_s0 + $0x8] sm:$0xff] }
   0xc   :  { %v1280_v48 = vpack.c.bf16 %v52_v47, %v50_v46  ;;  %v20_v49 = vld [vmem:[%s1523_s1] sm:$0xff]  ;;  %v789_v59 = vld [vmem:[%s1524_s0 + $0x10] sm:$0xff]  ;;  %v790_v60 = vld [vmem:[%s1524_s0 + $0x18] sm:$0xff] }
   0xd   :  { %821 = vmatpush1.bf16.msra.mxu0 %v1186_v20  ;;  %853 = vmatpush1.bf16.msra.mxu1 %v1186_v20  ;;  %v58_v52 = vld [vmem:[%s1524_s0] sm:$0xff]  ;;  %v793_v5 = vld [vmem:[%s1524_s0 + $0x28] sm:$0xff]  ;;  %v795_v13 = vld [vmem:[%s1524_s0 + $0x30] sm:$0xff] }
   0xe   :  { %823 = vmatprep.subr.bf16.mxu0 %v1190_v21  ;;  %855 = vmatprep.subr.bf16.mxu1 %v1190_v21  ;;  %v792_v2 = vld [vmem:[%s1524_s0 + $0x20] sm:$0xff]  ;;  %v796_v16 = vld [vmem:[%s1524_s0 + $0x38] sm:$0xff]  ;;  %v799_v24 = vld [vmem:[%s1524_s0 + $0x48] sm:$0xff] }
   0xf   :  { %v804_v41 = vld [vmem:[%s1524_s0 + $0x60] sm:$0xff]  ;;  %v805_v43 = vld [vmem:[%s1524_s0 + $0x68] sm:$0xff] }
  0x11   :  { %825 = vmatpush1.bf16.msra.mxu0 %v1206_v26  ;;  %857 = vmatpush1.bf16.msra.mxu1 %v1206_v26 }
  0x12   :  { %827 = vmatprep.subr.bf16.mxu0 %v1210_v27  ;;  %859 = vmatprep.subr.bf16.mxu1 %v1210_v27 }
  0x15   :  { %829 = vmatpush1.bf16.msra.mxu0 %v1226_v32  ;;  %861 = vmatpush1.bf16.msra.mxu1 %v1226_v32 }
  0x16   :  { %831 = vmatprep.subr.bf16.mxu0 %v1230_v33  ;;  %863 = vmatprep.subr.bf16.mxu1 %v1230_v33 }
  0x19   :  { %833 = vmatpush1.bf16.msra.mxu0 %v1246_v38  ;;  %865 = vmatpush1.bf16.msra.mxu1 %v1246_v38 }
  0x1a   :  { %835 = vmatprep.subr.bf16.mxu0 %v1250_v39  ;;  %867 = vmatprep.subr.bf16.mxu1 %v1250_v39 }
  0x1d   :  { %837 = vmatpush1.bf16.msra.mxu0 %v1266_v44  ;;  %869 = vmatpush1.bf16.msra.mxu1 %v1266_v44 }
  0x1e   :  { %839 = vmatprep.subr.bf16.mxu0 %v1270_v45  ;;  %871 = vmatprep.subr.bf16.mxu1 %v1270_v45 }
  0x21   :  { %841 = vmatpush1.bf16.msra.mxu0 %v1280_v48  ;;  %873 = vmatpush1.bf16.msra.mxu1 %v1280_v48 }
  0x22   :  { %875 = vmatprep.subr.bf16.mxu0 %v1136_v4  ;;  %907 = vmatprep.subr.bf16.mxu1 %v1136_v4 }
  0x24   :  { %125 = vmatmul.mubr.f32.vlgmr.msra.gmra.mrb[0].mxu0 %v20_v49 }
  0x25   :  { %877 = vmatpush1.bf16.msra.mxu0 %v1147_v8  ;;  %303 = vmatprep.mubr.f32.mxu0 %v1099_v3 }
  0x26   :  { %879 = vmatprep.subr.bf16.mxu0 %v1149_v9 }
  0x29   :  { %881 = vmatpush1.bf16.msra.mxu0 %v1166_v14 }
  0x2a   :  { %883 = vmatprep.subr.bf16.mxu0 %v1170_v15 }
  0x2d   :  { %885 = vmatpush1.bf16.msra.mxu0 %v1186_v20 }
  0x2e   :  { %887 = vmatprep.subr.bf16.mxu0 %v1190_v21 }
  0x31   :  { %889 = vmatpush1.bf16.msra.mxu0 %v1206_v26 }
  0x32   :  { %891 = vmatprep.subr.bf16.mxu0 %v1210_v27 }
  0x35   :  { %893 = vmatpush1.bf16.msra.mxu0 %v1226_v32 }
  0x36   :  { %895 = vmatprep.subr.bf16.mxu0 %v1230_v33 }
  0x39   :  { %897 = vmatpush1.bf16.msra.mxu0 %v1246_v38 }
  0x3a   :  { %899 = vmatprep.subr.bf16.mxu0 %v1250_v39 }
  0x3d   :  { %901 = vmatpush1.bf16.msra.mxu0 %v1266_v44 }
  0x3e   :  { %903 = vmatprep.subr.bf16.mxu0 %v1270_v45 }
  0x41   :  { %905 = vmatpush1.bf16.msra.mxu0 %v1280_v48 }
  0x42   :  { %939 = vmatprep.subr.bf16.mxu0 %v1136_v4 }
  0xf7   :  { %v126_v54 = vpop.f32.mrb[0].mxu0 }
  0xf8   :  { %v131_v55 = vadd.f32 %v126_v54, %v58_v52  ;;  %v128_v56 = vpop.f32.mrb[1].mxu0 }
  0xf9   :  { %v1318_v57 = vadd.f32 %v128_v56, %v59_v53 }
  0xfa   :  { %214 = vmatmul.mubr.f32.vlgmr.msra.gmra.mrb[0].mxu1 %v131_v55 }
  0xfb   :  { %v133_v58 = vsel %vm56_vm0, %v1318_v57, -inf  ;;  %909 = vmatpush1.bf16.msra.mxu1 %v1147_v8  ;;  %393 = vmatprep.mubr.f32.mxu1 %v1099_v3 }
  0xfc   :  { %134 = vmax.xlane.f32.xlu0 %v133_v58  ;;  %911 = vmatprep.subr.bf16.mxu1 %v1149_v9 }
  0xff   :  { %913 = vmatpush1.bf16.msra.mxu1 %v1166_v14 }
 0x100   :  { %915 = vmatprep.subr.bf16.mxu1 %v1170_v15 }
 0x103   :  { %917 = vmatpush1.bf16.msra.mxu1 %v1186_v20 }
 0x104   :  { %919 = vmatprep.subr.bf16.mxu1 %v1190_v21 }
 0x107   :  { %921 = vmatpush1.bf16.msra.mxu1 %v1206_v26 }
 0x108   :  { %923 = vmatprep.subr.bf16.mxu1 %v1210_v27 }
 0x10b   :  { %925 = vmatpush1.bf16.msra.mxu1 %v1226_v32 }
 0x10c   :  { %927 = vmatprep.subr.bf16.mxu1 %v1230_v33 }
 0x10f   :  { %929 = vmatpush1.bf16.msra.mxu1 %v1246_v38 }
 0x110   :  { %931 = vmatprep.subr.bf16.mxu1 %v1250_v39 }
 0x113   :  { %933 = vmatpush1.bf16.msra.mxu1 %v1266_v44 }
 0x114   :  { %935 = vmatprep.subr.bf16.mxu1 %v1270_v45 }
 0x117   :  { %937 = vmatpush1.bf16.msra.mxu1 %v1280_v48 }
 0x118   :  { %971 = vmatprep.subr.bf16.mxu1 %v1136_v4 }
 0x1cd   :  { %v215_v61 = vpop.f32.mrb[0].mxu1 }
 0x1ce   :  { %v220_v62 = vadd.f32 %v789_v59, %v215_v61  ;;  %v217_v63 = vpop.f32.mrb[1].mxu1 }
 0x1cf   :  { %v1346_v0 = vadd.f32 %v790_v60, %v217_v63 }
 0x1d0   :  { %304 = vmatmul.mubr.f32.vlgmr.msra.gmra.mrb[2].mxu0 %v220_v62 }
 0x1d1   :  { %v222_v1 = vsel %vm56_vm0, %v1346_v0, -inf  ;;  %941 = vmatpush1.bf16.msra.mxu0 %v1147_v8  ;;  %483 = vmatprep.mubr.f32.mxu0 %v1099_v3 }
 0x1d2   :  { %223 = vmax.xlane.f32.xlu0 %v222_v1  ;;  %943 = vmatprep.subr.bf16.mxu0 %v1149_v9 }
 0x1d5   :  { %945 = vmatpush1.bf16.msra.mxu0 %v1166_v14 }
 0x1d6   :  { %947 = vmatprep.subr.bf16.mxu0 %v1170_v15 }
 0x1d9   :  { %949 = vmatpush1.bf16.msra.mxu0 %v1186_v20 }
 0x1da   :  { %951 = vmatprep.subr.bf16.mxu0 %v1190_v21 }
 0x1dd   :  { %953 = vmatpush1.bf16.msra.mxu0 %v1206_v26 }
 0x1de   :  { %955 = vmatprep.subr.bf16.mxu0 %v1210_v27 }
 0x1e1   :  { %957 = vmatpush1.bf16.msra.mxu0 %v1226_v32 }
 0x1e2   :  { %959 = vmatprep.subr.bf16.mxu0 %v1230_v33 }
 0x1e5   :  { %961 = vmatpush1.bf16.msra.mxu0 %v1246_v38 }
 0x1e6   :  { %963 = vmatprep.subr.bf16.mxu0 %v1250_v39 }
 0x1e9   :  { %965 = vmatpush1.bf16.msra.mxu0 %v1266_v44 }
 0x1ea   :  { %967 = vmatprep.subr.bf16.mxu0 %v1270_v45 }
 0x1ed   :  { %969 = vmatpush1.bf16.msra.mxu0 %v1280_v48 }
 0x1ee   :  { %1003 = vmatprep.subr.bf16.mxu0 %v1136_v4 }
 0x2a3   :  { %v305_v6 = vpop.f32.mrb[2].mxu0 }
 0x2a4   :  { %v310_v7 = vadd.f32 %v792_v2, %v305_v6  ;;  %v307_v10 = vpop.f32.mrb[3].mxu0 }
 0x2a5   :  { %v1374_v11 = vadd.f32 %v793_v5, %v307_v10 }
 0x2a6   :  { %394 = vmatmul.mubr.f32.vlgmr.msra.gmra.mrb[2].mxu1 %v310_v7 }
 0x2a7   :  { %v312_v12 = vsel %vm56_vm0, %v1374_v11, -inf  ;;  %973 = vmatpush1.bf16.msra.mxu1 %v1147_v8  ;;  %573 = vmatprep.mubr.f32.mxu1 %v1099_v3 }
 0x2a8   :  { %313 = vmax.xlane.f32.xlu1 %v312_v12  ;;  %975 = vmatprep.subr.bf16.mxu1 %v1149_v9 }
 0x2ab   :  { %977 = vmatpush1.bf16.msra.mxu1 %v1166_v14 }
 0x2ac   :  { %979 = vmatprep.subr.bf16.mxu1 %v1170_v15 }
 0x2af   :  { %981 = vmatpush1.bf16.msra.mxu1 %v1186_v20 }
 0x2b0   :  { %983 = vmatprep.subr.bf16.mxu1 %v1190_v21 }
 0x2b3   :  { %985 = vmatpush1.bf16.msra.mxu1 %v1206_v26 }
 0x2b4   :  { %987 = vmatprep.subr.bf16.mxu1 %v1210_v27 }
 0x2b7   :  { %989 = vmatpush1.bf16.msra.mxu1 %v1226_v32 }
 0x2b8   :  { %991 = vmatprep.subr.bf16.mxu1 %v1230_v33 }
 0x2bb   :  { %993 = vmatpush1.bf16.msra.mxu1 %v1246_v38 }
 0x2bc   :  { %995 = vmatprep.subr.bf16.mxu1 %v1250_v39 }
 0x2bf   :  { %997 = vmatpush1.bf16.msra.mxu1 %v1266_v44 }
 0x2c0   :  { %999 = vmatprep.subr.bf16.mxu1 %v1270_v45 }
 0x2c3   :  { %1001 = vmatpush1.bf16.msra.mxu1 %v1280_v48 }
 0x2c4   :  { %1035 = vmatprep.subr.bf16.mxu1 %v1136_v4  ;;  %v798_v4 = vld [vmem:[%s1524_s0 + $0x40] sm:$0xff] }
 0x379   :  { %v395_v17 = vpop.f32.mrb[2].mxu1 }
 0x37a   :  { %v400_v18 = vadd.f32 %v795_v13, %v395_v17  ;;  %v397_v19 = vpop.f32.mrb[3].mxu1 }
 0x37b   :  { %v1402_v22 = vadd.f32 %v796_v16, %v397_v19 }
 0x37c   :  { %484 = vmatmul.mubr.f32.vlgmr.msra.gmra.mrb[4].mxu0 %v400_v18 }
 0x37d   :  { %v402_v23 = vsel %vm56_vm0, %v1402_v22, -inf  ;;  %1005 = vmatpush1.bf16.msra.mxu0 %v1147_v8  ;;  %663 = vmatprep.mubr.f32.mxu0 %v1099_v3 }
 0x37e   :  { %403 = vmax.xlane.f32.xlu1 %v402_v23  ;;  %1007 = vmatprep.subr.bf16.mxu0 %v1149_v9 }
 0x381   :  { %1009 = vmatpush1.bf16.msra.mxu0 %v1166_v14 }
 0x382   :  { %1011 = vmatprep.subr.bf16.mxu0 %v1170_v15 }
 0x385   :  { %1013 = vmatpush1.bf16.msra.mxu0 %v1186_v20 }
 0x386   :  { %1015 = vmatprep.subr.bf16.mxu0 %v1190_v21 }
 0x389   :  { %1017 = vmatpush1.bf16.msra.mxu0 %v1206_v26 }
 0x38a   :  { %1019 = vmatprep.subr.bf16.mxu0 %v1210_v27 }
 0x38d   :  { %1021 = vmatpush1.bf16.msra.mxu0 %v1226_v32 }
 0x38e   :  { %1023 = vmatprep.subr.bf16.mxu0 %v1230_v33 }
 0x391   :  { %1025 = vmatpush1.bf16.msra.mxu0 %v1246_v38 }
 0x392   :  { %1027 = vmatprep.subr.bf16.mxu0 %v1250_v39 }
 0x395   :  { %1029 = vmatpush1.bf16.msra.mxu0 %v1266_v44 }
 0x396   :  { %1031 = vmatprep.subr.bf16.mxu0 %v1270_v45 }
 0x399   :  { %1033 = vmatpush1.bf16.msra.mxu0 %v1280_v48 }
 0x44f   :  { %v485_v25 = vpop.f32.mrb[4].mxu0 }
 0x450   :  { %v490_v28 = vadd.f32 %v798_v4, %v485_v25  ;;  %v487_v29 = vpop.f32.mrb[5].mxu0  ;;  %v807_v25 = vld [vmem:[%s1524_s0 + $0x70] sm:$0xff] }
 0x451   :  { %v491_v30 = vadd.f32 %v799_v24, %v487_v29 }
 0x452   :  { %574 = vmatmul.mubr.f32.vlgmr.msra.gmra.mrb[4].mxu1 %v490_v28 }
 0x453   :  { %v492_v31 = vsel %vm56_vm0, %v491_v30, -inf  ;;  %1037 = vmatpush1.bf16.msra.mxu1 %v1147_v8  ;;  %753 = vmatprep.mubr.f32.mxu1 %v1099_v3  ;;  %v801_v3 = vld [vmem:[%s1524_s0 + $0x50] sm:$0xff]  ;;  %v802_v8 = vld [vmem:[%s1524_s0 + $0x58] sm:$0xff] }
 0x454   :  { %493 = vmax.xlane.f32.xlu0 %v492_v31  ;;  %1039 = vmatprep.subr.bf16.mxu1 %v1149_v9 }
 0x457   :  { %1041 = vmatpush1.bf16.msra.mxu1 %v1166_v14 }
 0x458   :  { %1043 = vmatprep.subr.bf16.mxu1 %v1170_v15 }
 0x45b   :  { %1045 = vmatpush1.bf16.msra.mxu1 %v1186_v20 }
 0x45c   :  { %1047 = vmatprep.subr.bf16.mxu1 %v1190_v21 }
 0x45f   :  { %1049 = vmatpush1.bf16.msra.mxu1 %v1206_v26  ;;  %v135_v26 = vpop.xlane.xlu0 %134 }
 0x460   :  { %1051 = vmatprep.subr.bf16.mxu1 %v1210_v27  ;;  %v136_v27 = vsub.f32 %v1318_v57, %v135_v26 }
 0x462   :  { %v137_v34 = vsel %vm56_vm0, %v136_v27, -inf }
 0x463   :  { %1053 = vmatpush1.bf16.msra.mxu1 %v1226_v32  ;;  %v224_v32 = vpop.xlane.xlu0 %223  ;;  %v138_v37 = vmul.f32 1.442695, %v137_v34 }
 0x464   :  { %1055 = vmatprep.subr.bf16.mxu1 %v1230_v33  ;;  %v314_v33 = vpop.xlane.xlu1 %313  ;;  %v225_v12 = vsub.f32 %v1346_v0, %v224_v32 }
 0x465   :  { %v315_v35 = vsub.f32 %v1374_v11, %v314_v33  ;;  %1067 = vpow2.f32 %v138_v37 }
 0x466   :  { %v226_v16 = vsel %vm56_vm0, %v225_v12, -inf }
 0x467   :  { %1057 = vmatpush1.bf16.msra.mxu1 %v1246_v38  ;;  %v316_v38 = vsel %vm56_vm0, %v315_v35, -inf  ;;  %v227_v19 = vmul.f32 1.442695, %v226_v16 }
 0x468   :  { %1059 = vmatprep.subr.bf16.mxu1 %v1250_v39  ;;  %v317_v40 = vmul.f32 1.442695, %v316_v38  ;;  %v404_v13 = vpop.xlane.xlu1 %403 }
 0x469   :  { %v405_v17 = vsub.f32 %v1402_v22, %v404_v13  ;;  %v808_v22 = vld [vmem:[%s1524_s0 + $0x78] sm:$0xff] }
 0x46a   :  { %1069 = vpow2.f32 %v317_v40 }
 0x46b   :  { %1061 = vmatpush1.bf16.msra.mxu1 %v1266_v44  ;;  %v406_v23 = vsel %vm56_vm0, %v405_v17, -inf }
 0x46c   :  { %1063 = vmatprep.subr.bf16.mxu1 %v1270_v45  ;;  %v407_v24 = vmul.f32 1.442695, %v406_v23 }
 0x46f   :  { %1065 = vmatpush1.bf16.msra.mxu1 %v1280_v48  ;;  %v1068_v50 = vpop.eup %1067 }
 0x474   :  { %v1070_v52 = vpop.eup %1069 }
 0x4e1   :  { %v494_v36 = vpop.xlane.xlu0 %493 }
 0x4e2   :  { %v495_v39 = vsub.f32 %v491_v30, %v494_v36 }
 0x4e4   :  { %v496_v42 = vsel %vm56_vm0, %v495_v39, -inf }
 0x4e5   :  { %v497_v47 = vmul.f32 1.442695, %v496_v42 }
 0x4e7   :  { %1071 = vpow2.f32 %v497_v47 }
 0x4f1   :  { %v1072_v53 = vpop.eup %1071 }
 0x525   :  { %v575_v9 = vpop.f32.mrb[4].mxu1 }
 0x526   :  { %v580_v14 = vadd.f32 %v801_v3, %v575_v9  ;;  %v577_v15 = vpop.f32.mrb[5].mxu1 }
 0x527   :  { %v1453_v20 = vadd.f32 %v802_v8, %v577_v15 }
 0x528   :  { %664 = vmatmul.mubr.f32.vlgmr.msra.gmra.mrb[6].mxu0 %v580_v14 }
 0x529   :  { %v582_v21 = vsel %vm56_vm0, %v1453_v20, -inf }
 0x52a   :  { %583 = vmax.xlane.f32.xlu1 %v582_v21 }
 0x5b7   :  { %v584_v18 = vpop.xlane.xlu1 %583 }
 0x5b8   :  { %v585_v4 = vsub.f32 %v1453_v20, %v584_v18 }
 0x5ba   :  { %v586_v0 = vsel %vm56_vm0, %v585_v4, -inf }
 0x5bb   :  { %v587_v31 = vmul.f32 1.442695, %v586_v0 }
 0x5fb   :  { %v665_v44 = vpop.f32.mrb[6].mxu0 }
 0x5fc   :  { %v670_v45 = vadd.f32 %v804_v41, %v665_v44  ;;  %v667_v46 = vpop.f32.mrb[7].mxu0 }
 0x5fd   :  { %v671_v48 = vadd.f32 %v805_v43, %v667_v46 }
 0x5fe   :  { %754 = vmatmul.mubr.f32.vlgmr.msra.gmra.mrb[6].mxu1 %v670_v45 }
 0x5ff   :  { %v672_v49 = vsel %vm56_vm0, %v671_v48, -inf }
 0x600   :  { %673 = vmax.xlane.f32.xlu0 %v672_v49 }
 0x604   :  { %140 = vadd.xlane.f32.xlu0 %v1068_v50 }
 0x608   :  { %319 = vadd.xlane.f32.xlu0 %v1070_v52 }
 0x60c   :  { %499 = vadd.xlane.f32.xlu0 %v1072_v53 }
 0x68d   :  { %v674_v54 = vpop.xlane.xlu0 %673 }
 0x68e   :  { %v675_v55 = vsub.f32 %v671_v48, %v674_v54 }
 0x690   :  { %v676_v56 = vsel %vm56_vm0, %v675_v55, -inf }
 0x691   :  { %v677_v57 = vmul.f32 1.442695, %v676_v56  ;;  %v141_v58 = vpop.xlane.xlu0 %140 }
 0x692   :  { %1073 = vlog2.f32 %v141_v58 }
 0x693   :  { %1075 = vpow2.f32 %v677_v57 }
 0x695   :  { %v320_v59 = vpop.xlane.xlu0 %319 }
 0x696   :  { %1077 = vlog2.f32 %v320_v59 }
 0x699   :  { %v500_v60 = vpop.xlane.xlu0 %499 }
 0x69a   :  { %1079 = vlog2.f32 %v500_v60 }
 0x69b   :  { %1081 = vpow2.f32 %v227_v19 }
 0x69c   :  { %v1074_v61 = vpop.eup %1073  ;;  %1083 = vpow2.f32 %v407_v24 }
 0x69d   :  { %v1076_v62 = vpop.eup %1075  ;;  %v143_v63 = vmul.f32 0.6931472, %v1074_v61  ;;  %1085 = vpow2.f32 %v587_v31 }
 0x69e   :  { %679 = vadd.xlane.f32.xlu0 %v1076_v62 }
 0x69f   :  { %v144_v1 = vsub.f32 %v137_v34, %v143_v63 }
 0x6a0   :  { %v1078_v2 = vpop.eup %1077 }
 0x6a1   :  { %145 = vst [vmem:[%s1525_s3] sm:$0xff] %v144_v1  ;;  %v322_v5 = vmul.f32 0.6931472, %v1078_v2 }
 0x6a3   :  { %v323_v6 = vsub.f32 %v316_v38, %v322_v5 }
 0x6a4   :  { %v1080_v7 = vpop.eup %1079 }
 0x6a5   :  { %794 = vst [vmem:[%s1525_s3 + $0x10] sm:$0xff] %v323_v6  ;;  %v502_v10 = vmul.f32 0.6931472, %v1080_v7  ;;  %v1082_v9 = vpop.eup %1081 }
 0x6a6   :  { %v1084_v14 = vpop.eup %1083 }
 0x6a7   :  { %v503_v11 = vsub.f32 %v496_v42, %v502_v10  ;;  %v1086_v15 = vpop.eup %1085 }
 0x6a9   :  { %800 = vst [vmem:[%s1525_s3 + $0x20] sm:$0xff] %v503_v11 }
 0x6d1   :  { %v755_v28 = vpop.f32.mrb[6].mxu1 }
 0x6d2   :  { %v760_v29 = vadd.f32 %v807_v25, %v755_v28  ;;  %v757_v30 = vpop.f32.mrb[7].mxu1 }
 0x6d3   :  { %v761_v3 = vadd.f32 %v808_v22, %v757_v30 }
 0x6d4   :  { %780 = vst [vmem:[%s1526_s4] sm:$0xff] %v760_v29 }
 0x6d5   :  { %v762_v8 = vsel %vm56_vm0, %v761_v3, -inf }
 0x6d6   :  { %763 = vmax.xlane.f32.xlu1 %v762_v8 }
 0x6da   :  { %229 = vadd.xlane.f32.xlu1 %v1082_v9 }
 0x6de   :  { %409 = vadd.xlane.f32.xlu1 %v1084_v14 }
 0x6e2   :  { %589 = vadd.xlane.f32.xlu1 %v1086_v15 }
 0x72b   :  { %v680_v20 = vpop.xlane.xlu0 %679 }
 0x72c   :  { %1087 = vlog2.f32 %v680_v20 }
 0x736   :  { %v1088_v21 = vpop.eup %1087 }
 0x737   :  { %v682_v26 = vmul.f32 0.6931472, %v1088_v21 }
 0x739   :  { %v683_v27 = vsub.f32 %v676_v56, %v682_v26 }
 0x73b   :  { %806 = vst [vmem:[%s1525_s3 + $0x30] sm:$0xff] %v683_v27 }
 0x763   :  { %v764_v32 = vpop.xlane.xlu1 %763 }
 0x764   :  { %v765_v33 = vsub.f32 %v761_v3, %v764_v32 }
 0x766   :  { %v766_v34 = vsel %vm56_vm0, %v765_v33, -inf }
 0x767   :  { %v767_v35 = vmul.f32 1.442695, %v766_v34  ;;  %v230_v36 = vpop.xlane.xlu1 %229 }
 0x768   :  { %1089 = vlog2.f32 %v230_v36 }
 0x769   :  { %1091 = vpow2.f32 %v767_v35 }
 0x76b   :  { %v410_v37 = vpop.xlane.xlu1 %409 }
 0x76c   :  { %1093 = vlog2.f32 %v410_v37 }
 0x76f   :  { %v590_v38 = vpop.xlane.xlu1 %589 }
 0x770   :  { %1095 = vlog2.f32 %v590_v38 }
 0x772   :  { %v1090_v39 = vpop.eup %1089 }
 0x773   :  { %v1092_v40 = vpop.eup %1091  ;;  %v232_v41 = vmul.f32 0.6931472, %v1090_v39 }
 0x774   :  { %769 = vadd.xlane.f32.xlu1 %v1092_v40 }
 0x775   :  { %v233_v42 = vsub.f32 %v226_v16, %v232_v41 }
 0x776   :  { %v1094_v43 = vpop.eup %1093 }
 0x777   :  { %791 = vst [vmem:[%s1525_s3 + $0x8] sm:$0xff] %v233_v42  ;;  %v412_v51 = vmul.f32 0.6931472, %v1094_v43 }
 0x779   :  { %v413_v44 = vsub.f32 %v406_v23, %v412_v51 }
 0x77a   :  { %v1096_v45 = vpop.eup %1095 }
 0x77b   :  { %797 = vst [vmem:[%s1525_s3 + $0x18] sm:$0xff] %v413_v44  ;;  %v592_v46 = vmul.f32 0.6931472, %v1096_v45 }
 0x77d   :  { %v593_v47 = vsub.f32 %v586_v0, %v592_v46 }
 0x77f   :  { %803 = vst [vmem:[%s1525_s3 + $0x28] sm:$0xff] %v593_v47 }
 0x801   :  { %v770_v48 = vpop.xlane.xlu1 %769 }
 0x802   :  { %1097 = vlog2.f32 %v770_v48 }
 0x80c   :  { %v1098_v49 = vpop.eup %1097 }
 0x80d   :  { %v772_v50 = vmul.f32 0.6931472, %v1098_v49 }
 0x80f   :  { %v773_v52 = vsub.f32 %v766_v34, %v772_v50 }
 0x811   :  { %809 = vst [vmem:[%s1525_s3 + $0x38] sm:$0xff] %v773_v52 }

</bundles_post_ra>
